<compile_context>
chip_gen: v7x
topology: tpu7x:2x2x1
jax: 0.10.0
libtpu: 0.0.40
codegen_flags: <defaults>
</compile_context>

<pallas_src>
import functools

import jax
import jax.numpy as jnp
from jax.experimental import pallas as pl
from jax.experimental.pallas import tpu as pltpu

LN_EPS = 1e-5  # PyTorch nn.LayerNorm default


def critic_kernel(x_ref, ws_ref, wa_ref, w1s_ref, w1a_ref, w2_ref, slab_ref,
                  out_ref, *, sdp):
    """Transposed layout: activations are (features, TB); batch lives on lanes."""
    f32 = jnp.float32
    bf16 = jnp.bfloat16
    H = ws_ref.shape[0]        # hidden_dim
    Hh = wa_ref.shape[0]       # hidden_dim // 2

    slab = slab_ref[...]       # (H, 16) packed small params, f32

    def pcol(c, rows):
        # column c of the slab, truncated to `rows` features -> (rows, 1)
        return slab[0:rows, c:c + 1]

    def ln_relu(x, gamma, beta):
        # LayerNorm over the feature axis (sublanes), per batch column, in f32.
        # Two-pass variance E[(x-mu)^2] (avoids E[x^2]-mu^2 cancellation).
        # Padded batch columns are all-zero -> var=0 -> rsqrt(eps) is a large
        # but finite value; those lanes are sliced off in the wrapper (benign).
        mu = jnp.mean(x, axis=0, keepdims=True)                  # (1, TB)
        d = x - mu
        var = jnp.mean(d * d, axis=0, keepdims=True)
        y = d * jax.lax.rsqrt(var + LN_EPS) * gamma + beta
        return jnp.maximum(y, 0.0)                               # eval Dropout = id

    x = x_ref[...]             # (sdp+adp, TB) bf16 fused [state | action]
    xs = x[0:sdp, :]
    xa = x[sdp:, :]

    # state branch: Linear -> LayerNorm -> ReLU
    zs = jnp.dot(ws_ref[...], xs, preferred_element_type=f32) + pcol(0, H)
    hs = ln_relu(zs, pcol(1, H), pcol(2, H))                     # (H, TB) f32

    # action branch
    za = jnp.dot(wa_ref[...], xa, preferred_element_type=f32) + pcol(3, Hh)
    ha = ln_relu(za, pcol(4, Hh), pcol(5, Hh))                   # (Hh, TB) f32

    # combined_net layer 1: concat implemented as a split matmul (bf16 operands)
    z1 = (jnp.dot(w1s_ref[...], hs.astype(bf16), preferred_element_type=f32)
          + jnp.dot(w1a_ref[...], ha.astype(bf16), preferred_element_type=f32)
          + pcol(6, H))
    h1 = ln_relu(z1, pcol(7, H), pcol(8, H))                     # (H, TB)

    # combined_net layer 2
    z2 = jnp.dot(w2_ref[...], h1.astype(bf16),
                 preferred_element_type=f32) + pcol(9, Hh)
    h2 = ln_relu(z2, pcol(10, Hh), pcol(11, Hh))                 # (Hh, TB)

    # final Linear(Hh -> 1): VPU multiply + sublane reduce (no N=1 MXU matmul);
    # result is lane-dense: (1, TB) with batch on lanes.
    w3 = pcol(12, Hh)                      # (Hh, 1)
    b3 = slab[0:1, 13:14]                  # (1, 1)
    out_ref[...] = jnp.sum(h2 * w3, axis=0, keepdims=True) + b3


def _round_up(x, m):
    return ((x + m - 1) // m) * m


def prepare_params(p):
    """One-time conversion of PyTorch-layout params into kernel-ready form.

    Hoisted out of the per-call path: bf16 weight casts, W1 pre-split into its
    state/action halves, the 13 per-feature vectors (+ head weight/bias)
    packed into a single (H, 16) f32 slab, input feature dims padded to
    multiples of 16 for clean bf16 sublane tiling.
    """
    H, state_dim = p["Ws"].shape
    Hh, action_dim = p["Wa"].shape
    assert H % 16 == 0, "hidden_dim must be a multiple of 16 for this kernel"
    sdp = _round_up(state_dim, 16)
    adp = _round_up(action_dim, 16)
    bf16 = jnp.bfloat16

    def pad_cols(w, cols):
        return jnp.pad(w.astype(jnp.float32), ((0, 0), (0, cols - w.shape[1])))

    ws = pad_cols(p["Ws"], sdp).astype(bf16)          # (H, sdp)
    wa = pad_cols(p["Wa"], adp).astype(bf16)          # (Hh, adp)
    w1s = p["W1"][:, :H].astype(bf16)                 # (H, H)
    w1a = p["W1"][:, H:].astype(bf16)                 # (H, Hh)
    w2 = p["W2"].astype(bf16)                         # (Hh, H)

    def col(v):
        v = jnp.asarray(v, jnp.float32).reshape(-1)
        return jnp.pad(v, (0, H - v.shape[0]))

    zeros = jnp.zeros((H,), jnp.float32)
    slab = jnp.stack(
        [col(p["bs"]), col(p["gs"]), col(p["bts"]),
         col(p["ba"]), col(p["ga"]), col(p["bta"]),
         col(p["b1"]), col(p["g1"]), col(p["bt1"]),
         col(p["b2"]), col(p["g2"]), col(p["bt2"]),
         col(p["W3"][0]), col(p["b3"]), zeros, zeros],
        axis=1)                                        # (H, 16)

    return dict(ws=ws, wa=wa, w1s=w1s, w1a=w1a, w2=w2, slab=slab,
                dims=(H, Hh, state_dim, action_dim, sdp, adp))


def _pick_tiling(B, H, Hh, sdp, adp, batch_tile):
    kind = jax.devices()[0].device_kind.lower()
    dual_core = ("v7" in kind) or ("7x" in kind)   # v7x: 2 TC/chip, 64 MiB/TC
    if batch_tile is None:
        # v5e/v6e: bigger tiles amortize per-step overhead and fill the MXU N
        # dim (multiple of 256); v7x: smaller tiles, leave VMEM headroom.
        batch_tile = 512 if dual_core else 1024
    TB = min(_round_up(batch_tile, 128), _round_up(B, 128))
    if dual_core:
        # Force >= 2 grid steps whenever possible so both TensorCores get work.
        TB = min(TB, _round_up(pl.cdiv(B, 2), 128))
    TB = max(TB, 128)
    Bp = _round_up(B, TB)

    # Rough VMEM footprint: double-buffered I/O tiles + (double-buffered)
    # resident weights + live f32 intermediates.  Only raise the scoped limit
    # when it exceeds the 32 MiB default.
    weights = 2 * ((H * sdp + Hh * adp + H * H + 2 * H * Hh) * 2 + H * 16 * 4)
    tiles = 2 * ((sdp + adp) * TB * 2 + TB * 4)
    live = 6 * H * TB * 4
    est = weights + tiles + live
    vmem_limit = None
    if est > 30 * 2**20:
        cap = (48 if dual_core else 100) * 2**20
        vmem_limit = min(int(est * 3 // 2), cap)
    return TB, Bp, vmem_limit


def critic_forward(state, action, kp, *, batch_tile=None):
    """state: (B, state_dim), action: (B, action_dim) -> q: (B, 1)."""
    H, Hh, state_dim, action_dim, sdp, adp = kp["dims"]
    B = state.shape[0]
    TB, Bp, vmem_limit = _pick_tiling(B, H, Hh, sdp, adp, batch_tile)

    # Layout plumbing (XLA side, cheap): fuse [state | action] on the feature
    # axis, put batch on lanes, pad features to the bf16-padded widths and
    # batch to a multiple of TB (padded columns are discarded at the end).
    xs = jnp.pad(state.astype(jnp.float32),
                 ((0, Bp - B), (0, sdp - state_dim)))
    xa = jnp.pad(action.astype(jnp.float32),
                 ((0, Bp - B), (0, adp - action_dim)))
    x = jnp.concatenate([xs, xa], axis=1).T.astype(jnp.bfloat16)  # (sdp+adp, Bp)

    tile = lambda i: (0, i)       # activation / output tiles march over batch
    const = lambda i: (0, 0)      # weights stay VMEM-resident

    flops = 2 * Bp * (H * sdp + Hh * adp + H * (H + Hh) + Hh * H)
    weight_bytes = (kp["ws"].size + kp["wa"].size + kp["w1s"].size
                    + kp["w1a"].size + kp["w2"].size) * 2 + kp["slab"].size * 4
    bytes_accessed = int(x.size * 2 + Bp * 4 + weight_bytes)

    out = pl.pallas_call(
        functools.partial(critic_kernel, sdp=sdp),
        grid=(Bp // TB,),
        in_specs=[
            pl.BlockSpec((sdp + adp, TB), tile),       # fused activations
            pl.BlockSpec((H, sdp), const),             # Ws   (bf16, resident)
            pl.BlockSpec((Hh, adp), const),            # Wa
            pl.BlockSpec((H, H), const),               # W1[:, :H]
            pl.BlockSpec((H, Hh), const),              # W1[:, H:]
            pl.BlockSpec((Hh, H), const),              # W2
            pl.BlockSpec((H, 16), const),              # packed small params
        ],
        out_specs=pl.BlockSpec((1, TB), tile),
        out_shape=jax.ShapeDtypeStruct((1, Bp), jnp.float32),
        compiler_params=pltpu.CompilerParams(
            dimension_semantics=("parallel",),
            vmem_limit_bytes=vmem_limit),
        cost_estimate=pl.CostEstimate(
            flops=int(flops),
            transcendentals=int(4 * Bp),
            bytes_accessed=bytes_accessed),
    )(x, kp["ws"], kp["wa"], kp["w1s"], kp["w1a"], kp["w2"], kp["slab"])

    return out[0, :B][:, None]                         # (B, 1)


# ---------------------------------------------------------------------------
# deterministic parameter init (PyTorch layout: Linear weight = (out, in);
# orthogonal with gain sqrt(2), zero bias, LayerNorm gamma=1 / beta=0)
# ---------------------------------------------------------------------------
def orthogonal_init(key, out_dim, in_dim, gain):
    n, m = max(out_dim, in_dim), min(out_dim, in_dim)
    a = jax.random.normal(key, (n, m), dtype=jnp.float32)
    q, r = jnp.linalg.qr(a)
    d = jnp.diag(r)
    q = q * jnp.where(d == 0, 1.0, jnp.sign(d))[None, :]
    w = q if out_dim >= in_dim else q.T                # (out_dim, in_dim)
    return (gain * w).astype(jnp.float32)


def make_params(key, state_dim, action_dim, hidden_dim):
    H, Hh = hidden_dim, hidden_dim // 2
    gain = float(jnp.sqrt(2.0))
    ks = jax.random.split(key, 5)
    p = {}
    # state_net: Linear(state_dim, H) + LayerNorm(H)
    p["Ws"] = orthogonal_init(ks[0], H, state_dim, gain)
    p["bs"] = jnp.zeros((H,), jnp.float32)
    p["gs"] = jnp.ones((H,), jnp.float32)
    p["bts"] = jnp.zeros((H,), jnp.float32)
    # action_net: Linear(action_dim, H//2) + LayerNorm(H//2)
    p["Wa"] = orthogonal_init(ks[1], Hh, action_dim, gain)
    p["ba"] = jnp.zeros((Hh,), jnp.float32)
    p["ga"] = jnp.ones((Hh,), jnp.float32)
    p["bta"] = jnp.zeros((Hh,), jnp.float32)
    # combined_net layer 1: Linear(H + H//2, H) + LayerNorm(H)
    p["W1"] = orthogonal_init(ks[2], H, H + Hh, gain)
    p["b1"] = jnp.zeros((H,), jnp.float32)
    p["g1"] = jnp.ones((H,), jnp.float32)
    p["bt1"] = jnp.zeros((H,), jnp.float32)
    # combined_net layer 2: Linear(H, H//2) + LayerNorm(H//2)
    p["W2"] = orthogonal_init(ks[3], Hh, H, gain)
    p["b2"] = jnp.zeros((Hh,), jnp.float32)
    p["g2"] = jnp.ones((Hh,), jnp.float32)
    p["bt2"] = jnp.zeros((Hh,), jnp.float32)
    # final: Linear(H//2, 1)
    p["W3"] = orthogonal_init(ks[4], 1, Hh, gain)
    p["b3"] = jnp.zeros((1,), jnp.float32)
    return p


def reference_forward(state, action, p):
    def ln_relu(x, g, b):
        mu = jnp.mean(x, -1, keepdims=True)
        var = jnp.mean((x - mu) ** 2, -1, keepdims=True)
        return jnp.maximum((x - mu) / jnp.sqrt(var + LN_EPS) * g + b, 0.0)

    hs = ln_relu(state @ p["Ws"].T + p["bs"], p["gs"], p["bts"])
    ha = ln_relu(action @ p["Wa"].T + p["ba"], p["ga"], p["bta"])
    comb = jnp.concatenate([hs, ha], axis=-1)
    h1 = ln_relu(comb @ p["W1"].T + p["b1"], p["g1"], p["bt1"])
    h2 = ln_relu(h1 @ p["W2"].T + p["b2"], p["g2"], p["bt2"])
    return h2 @ p["W3"].T + p["b3"]


if __name__ == "__main__":
    B, STATE_DIM, ACTION_DIM, HIDDEN_DIM = 8, 16, 8, 32

    key = jax.random.PRNGKey(0)
    k_state, k_action, k_params = jax.random.split(key, 3)
    state = jax.random.normal(k_state, (B, STATE_DIM), dtype=jnp.float32)
    action = jax.random.normal(k_action, (B, ACTION_DIM), dtype=jnp.float32)
    params = make_params(k_params, STATE_DIM, ACTION_DIM, HIDDEN_DIM)

    kparams = prepare_params(params)          # one-time, off the per-call path
    q = critic_forward(state, action, kparams)
    q = jax.block_until_ready(q)

    q_ref = reference_forward(state, action, params)
    assert q.shape == (B, 1)
    # bf16 matmul operands (f32 accumulation): loosened tolerance vs f32 ref.
    assert jnp.allclose(q, q_ref, atol=5e-2, rtol=5e-2), (q, q_ref)

    print("KERNEL_OK")
</pallas_src>

<mosaic_0001>
module attributes {stable_mosaic.version = 11 : i64} {
  func.func @critic_kernel(%arg0: i32, %arg1: memref<32x128xbf16, #tpu.memory_space<vmem>>, %arg2: memref<32x16xbf16, #tpu.memory_space<vmem>>, %arg3: memref<16x16xbf16, #tpu.memory_space<vmem>>, %arg4: memref<32x32xbf16, #tpu.memory_space<vmem>>, %arg5: memref<32x16xbf16, #tpu.memory_space<vmem>>, %arg6: memref<16x32xbf16, #tpu.memory_space<vmem>>, %arg7: memref<32x16xf32, #tpu.memory_space<vmem>>, %arg8: memref<1x128xf32, #tpu.memory_space<vmem>>) attributes {dimension_semantics = [#tpu.dimension_semantics<parallel>], iteration_bounds = array<i64: 1>, scalar_prefetch = 0 : i64, scratch_operands = 0 : i64, tpu.core_type = #tpu.core_type<tc>, window_params = [{transform_indices = @transform_0, window_bounds = array<i64: 32, 128>}, {pipeline_mode = #tpu.pipeline_mode<synchronous>, transform_indices = @transform_1, window_bounds = array<i64: 32, 16>}, {pipeline_mode = #tpu.pipeline_mode<synchronous>, transform_indices = @transform_2, window_bounds = array<i64: 16, 16>}, {pipeline_mode = #tpu.pipeline_mode<synchronous>, transform_indices = @transform_3, window_bounds = array<i64: 32, 32>}, {pipeline_mode = #tpu.pipeline_mode<synchronous>, transform_indices = @transform_4, window_bounds = array<i64: 32, 16>}, {pipeline_mode = #tpu.pipeline_mode<synchronous>, transform_indices = @transform_5, window_bounds = array<i64: 16, 32>}, {pipeline_mode = #tpu.pipeline_mode<synchronous>, transform_indices = @transform_6, window_bounds = array<i64: 32, 16>}, {transform_indices = @transform_7, window_bounds = array<i64: 1, 128>}]} {
    %c0 = arith.constant 0 : index
    %c0_0 = arith.constant 0 : index
    %0 = vector.load %arg7[%c0, %c0_0] : memref<32x16xf32, #tpu.memory_space<vmem>>, vector<32x16xf32>
    %c0_1 = arith.constant 0 : index
    %c0_2 = arith.constant 0 : index
    %1 = vector.load %arg1[%c0_1, %c0_2] : memref<32x128xbf16, #tpu.memory_space<vmem>>, vector<32x128xbf16>
    %2 = vector.extract_strided_slice %1 {offsets = [0, 0], sizes = [16, 128], strides = [1, 1]} : vector<32x128xbf16> to vector<16x128xbf16>
    %3 = vector.extract_strided_slice %1 {offsets = [16, 0], sizes = [16, 128], strides = [1, 1]} : vector<32x128xbf16> to vector<16x128xbf16>
    %c0_3 = arith.constant 0 : index
    %c0_4 = arith.constant 0 : index
    %4 = vector.load %arg2[%c0_3, %c0_4] : memref<32x16xbf16, #tpu.memory_space<vmem>>, vector<32x16xbf16>
    %cst = arith.constant dense<0.000000e+00> : vector<32x128xf32>
    %5 = tpu.matmul %4, %2, %cst {dimension_numbers = #tpu.dot_dimension_numbers<[1], [0], [0], [1], [0, 0, 1, 1], [], []>} : vector<32x16xbf16>, vector<16x128xbf16>, vector<32x128xf32> -> vector<32x128xf32>
    %6 = vector.extract_strided_slice %0 {offsets = [0, 0], sizes = [32, 1], strides = [1, 1]} : vector<32x16xf32> to vector<32x1xf32>
    %7 = vector.broadcast %6 : vector<32x1xf32> to vector<32x128xf32>
    %8 = arith.addf %5, %7 : vector<32x128xf32>
    %9 = vector.extract_strided_slice %0 {offsets = [0, 1], sizes = [32, 1], strides = [1, 1]} : vector<32x16xf32> to vector<32x1xf32>
    %10 = vector.extract_strided_slice %0 {offsets = [0, 2], sizes = [32, 1], strides = [1, 1]} : vector<32x16xf32> to vector<32x1xf32>
    %cst_5 = arith.constant dense<0.000000e+00> : vector<128xf32>
    %11 = vector.multi_reduction <add>, %8, %cst_5 [0] : vector<32x128xf32> to vector<128xf32>
    %12 = vector.shape_cast %11 : vector<128xf32> to vector<1x128xf32>
    %cst_6 = arith.constant 3.200000e+01 : f32
    %13 = vector.broadcast %cst_6 : f32 to vector<1x128xf32>
    %14 = arith.divf %12, %13 : vector<1x128xf32>
    %15 = vector.broadcast %14 : vector<1x128xf32> to vector<32x128xf32>
    %16 = arith.subf %8, %15 : vector<32x128xf32>
    %17 = arith.mulf %16, %16 : vector<32x128xf32>
    %cst_7 = arith.constant dense<0.000000e+00> : vector<128xf32>
    %18 = vector.multi_reduction <add>, %17, %cst_7 [0] : vector<32x128xf32> to vector<128xf32>
    %19 = vector.shape_cast %18 : vector<128xf32> to vector<1x128xf32>
    %cst_8 = arith.constant 3.200000e+01 : f32
    %20 = vector.broadcast %cst_8 : f32 to vector<1x128xf32>
    %21 = arith.divf %19, %20 : vector<1x128xf32>
    %cst_9 = arith.constant 9.99999974E-6 : f32
    %22 = vector.broadcast %cst_9 : f32 to vector<1x128xf32>
    %23 = arith.addf %21, %22 : vector<1x128xf32>
    %24 = math.rsqrt %23 : vector<1x128xf32>
    %25 = vector.broadcast %24 : vector<1x128xf32> to vector<32x128xf32>
    %26 = arith.mulf %16, %25 : vector<32x128xf32>
    %27 = vector.broadcast %9 : vector<32x1xf32> to vector<32x128xf32>
    %28 = arith.mulf %26, %27 : vector<32x128xf32>
    %29 = vector.broadcast %10 : vector<32x1xf32> to vector<32x128xf32>
    %30 = arith.addf %28, %29 : vector<32x128xf32>
    %cst_10 = arith.constant 0.000000e+00 : f32
    %31 = vector.broadcast %cst_10 : f32 to vector<32x128xf32>
    %32 = arith.maximumf %30, %31 : vector<32x128xf32>
    %c0_11 = arith.constant 0 : index
    %c0_12 = arith.constant 0 : index
    %33 = vector.load %arg3[%c0_11, %c0_12] : memref<16x16xbf16, #tpu.memory_space<vmem>>, vector<16x16xbf16>
    %cst_13 = arith.constant dense<0.000000e+00> : vector<16x128xf32>
    %34 = tpu.matmul %33, %3, %cst_13 {dimension_numbers = #tpu.dot_dimension_numbers<[1], [0], [0], [1], [0, 0, 1, 1], [], []>} : vector<16x16xbf16>, vector<16x128xbf16>, vector<16x128xf32> -> vector<16x128xf32>
    %35 = vector.extract_strided_slice %0 {offsets = [0, 3], sizes = [16, 1], strides = [1, 1]} : vector<32x16xf32> to vector<16x1xf32>
    %36 = vector.broadcast %35 : vector<16x1xf32> to vector<16x128xf32>
    %37 = arith.addf %34, %36 : vector<16x128xf32>
    %38 = vector.extract_strided_slice %0 {offsets = [0, 4], sizes = [16, 1], strides = [1, 1]} : vector<32x16xf32> to vector<16x1xf32>
    %39 = vector.extract_strided_slice %0 {offsets = [0, 5], sizes = [16, 1], strides = [1, 1]} : vector<32x16xf32> to vector<16x1xf32>
    %cst_14 = arith.constant dense<0.000000e+00> : vector<128xf32>
    %40 = vector.multi_reduction <add>, %37, %cst_14 [0] : vector<16x128xf32> to vector<128xf32>
    %41 = vector.shape_cast %40 : vector<128xf32> to vector<1x128xf32>
    %cst_15 = arith.constant 1.600000e+01 : f32
    %42 = vector.broadcast %cst_15 : f32 to vector<1x128xf32>
    %43 = arith.divf %41, %42 : vector<1x128xf32>
    %44 = vector.broadcast %43 : vector<1x128xf32> to vector<16x128xf32>
    %45 = arith.subf %37, %44 : vector<16x128xf32>
    %46 = arith.mulf %45, %45 : vector<16x128xf32>
    %cst_16 = arith.constant dense<0.000000e+00> : vector<128xf32>
    %47 = vector.multi_reduction <add>, %46, %cst_16 [0] : vector<16x128xf32> to vector<128xf32>
    %48 = vector.shape_cast %47 : vector<128xf32> to vector<1x128xf32>
    %cst_17 = arith.constant 1.600000e+01 : f32
    %49 = vector.broadcast %cst_17 : f32 to vector<1x128xf32>
    %50 = arith.divf %48, %49 : vector<1x128xf32>
    %cst_18 = arith.constant 9.99999974E-6 : f32
    %51 = vector.broadcast %cst_18 : f32 to vector<1x128xf32>
    %52 = arith.addf %50, %51 : vector<1x128xf32>
    %53 = math.rsqrt %52 : vector<1x128xf32>
    %54 = vector.broadcast %53 : vector<1x128xf32> to vector<16x128xf32>
    %55 = arith.mulf %45, %54 : vector<16x128xf32>
    %56 = vector.broadcast %38 : vector<16x1xf32> to vector<16x128xf32>
    %57 = arith.mulf %55, %56 : vector<16x128xf32>
    %58 = vector.broadcast %39 : vector<16x1xf32> to vector<16x128xf32>
    %59 = arith.addf %57, %58 : vector<16x128xf32>
    %cst_19 = arith.constant 0.000000e+00 : f32
    %60 = vector.broadcast %cst_19 : f32 to vector<16x128xf32>
    %61 = arith.maximumf %59, %60 : vector<16x128xf32>
    %c0_20 = arith.constant 0 : index
    %c0_21 = arith.constant 0 : index
    %62 = vector.load %arg4[%c0_20, %c0_21] : memref<32x32xbf16, #tpu.memory_space<vmem>>, vector<32x32xbf16>
    %63 = arith.truncf %32 : vector<32x128xf32> to vector<32x128xbf16>
    %cst_22 = arith.constant dense<0.000000e+00> : vector<32x128xf32>
    %64 = tpu.matmul %62, %63, %cst_22 {dimension_numbers = #tpu.dot_dimension_numbers<[1], [0], [0], [1], [0, 0, 1, 1], [], []>} : vector<32x32xbf16>, vector<32x128xbf16>, vector<32x128xf32> -> vector<32x128xf32>
    %c0_23 = arith.constant 0 : index
    %c0_24 = arith.constant 0 : index
    %65 = vector.load %arg5[%c0_23, %c0_24] : memref<32x16xbf16, #tpu.memory_space<vmem>>, vector<32x16xbf16>
    %66 = arith.truncf %61 : vector<16x128xf32> to vector<16x128xbf16>
    %cst_25 = arith.constant dense<0.000000e+00> : vector<32x128xf32>
    %67 = tpu.matmul %65, %66, %cst_25 {dimension_numbers = #tpu.dot_dimension_numbers<[1], [0], [0], [1], [0, 0, 1, 1], [], []>} : vector<32x16xbf16>, vector<16x128xbf16>, vector<32x128xf32> -> vector<32x128xf32>
    %68 = arith.addf %64, %67 : vector<32x128xf32>
    %69 = vector.extract_strided_slice %0 {offsets = [0, 6], sizes = [32, 1], strides = [1, 1]} : vector<32x16xf32> to vector<32x1xf32>
    %70 = vector.broadcast %69 : vector<32x1xf32> to vector<32x128xf32>
    %71 = arith.addf %68, %70 : vector<32x128xf32>
    %72 = vector.extract_strided_slice %0 {offsets = [0, 7], sizes = [32, 1], strides = [1, 1]} : vector<32x16xf32> to vector<32x1xf32>
    %73 = vector.extract_strided_slice %0 {offsets = [0, 8], sizes = [32, 1], strides = [1, 1]} : vector<32x16xf32> to vector<32x1xf32>
    %cst_26 = arith.constant dense<0.000000e+00> : vector<128xf32>
    %74 = vector.multi_reduction <add>, %71, %cst_26 [0] : vector<32x128xf32> to vector<128xf32>
    %75 = vector.shape_cast %74 : vector<128xf32> to vector<1x128xf32>
    %cst_27 = arith.constant 3.200000e+01 : f32
    %76 = vector.broadcast %cst_27 : f32 to vector<1x128xf32>
    %77 = arith.divf %75, %76 : vector<1x128xf32>
    %78 = vector.broadcast %77 : vector<1x128xf32> to vector<32x128xf32>
    %79 = arith.subf %71, %78 : vector<32x128xf32>
    %80 = arith.mulf %79, %79 : vector<32x128xf32>
    %cst_28 = arith.constant dense<0.000000e+00> : vector<128xf32>
    %81 = vector.multi_reduction <add>, %80, %cst_28 [0] : vector<32x128xf32> to vector<128xf32>
    %82 = vector.shape_cast %81 : vector<128xf32> to vector<1x128xf32>
    %cst_29 = arith.constant 3.200000e+01 : f32
    %83 = vector.broadcast %cst_29 : f32 to vector<1x128xf32>
    %84 = arith.divf %82, %83 : vector<1x128xf32>
    %cst_30 = arith.constant 9.99999974E-6 : f32
    %85 = vector.broadcast %cst_30 : f32 to vector<1x128xf32>
    %86 = arith.addf %84, %85 : vector<1x128xf32>
    %87 = math.rsqrt %86 : vector<1x128xf32>
    %88 = vector.broadcast %87 : vector<1x128xf32> to vector<32x128xf32>
    %89 = arith.mulf %79, %88 : vector<32x128xf32>
    %90 = vector.broadcast %72 : vector<32x1xf32> to vector<32x128xf32>
    %91 = arith.mulf %89, %90 : vector<32x128xf32>
    %92 = vector.broadcast %73 : vector<32x1xf32> to vector<32x128xf32>
    %93 = arith.addf %91, %92 : vector<32x128xf32>
    %cst_31 = arith.constant 0.000000e+00 : f32
    %94 = vector.broadcast %cst_31 : f32 to vector<32x128xf32>
    %95 = arith.maximumf %93, %94 : vector<32x128xf32>
    %c0_32 = arith.constant 0 : index
    %c0_33 = arith.constant 0 : index
    %96 = vector.load %arg6[%c0_32, %c0_33] : memref<16x32xbf16, #tpu.memory_space<vmem>>, vector<16x32xbf16>
    %97 = arith.truncf %95 : vector<32x128xf32> to vector<32x128xbf16>
    %cst_34 = arith.constant dense<0.000000e+00> : vector<16x128xf32>
    %98 = tpu.matmul %96, %97, %cst_34 {dimension_numbers = #tpu.dot_dimension_numbers<[1], [0], [0], [1], [0, 0, 1, 1], [], []>} : vector<16x32xbf16>, vector<32x128xbf16>, vector<16x128xf32> -> vector<16x128xf32>
    %99 = vector.extract_strided_slice %0 {offsets = [0, 9], sizes = [16, 1], strides = [1, 1]} : vector<32x16xf32> to vector<16x1xf32>
    %100 = vector.broadcast %99 : vector<16x1xf32> to vector<16x128xf32>
    %101 = arith.addf %98, %100 : vector<16x128xf32>
    %102 = vector.extract_strided_slice %0 {offsets = [0, 10], sizes = [16, 1], strides = [1, 1]} : vector<32x16xf32> to vector<16x1xf32>
    %103 = vector.extract_strided_slice %0 {offsets = [0, 11], sizes = [16, 1], strides = [1, 1]} : vector<32x16xf32> to vector<16x1xf32>
    %cst_35 = arith.constant dense<0.000000e+00> : vector<128xf32>
    %104 = vector.multi_reduction <add>, %101, %cst_35 [0] : vector<16x128xf32> to vector<128xf32>
    %105 = vector.shape_cast %104 : vector<128xf32> to vector<1x128xf32>
    %cst_36 = arith.constant 1.600000e+01 : f32
    %106 = vector.broadcast %cst_36 : f32 to vector<1x128xf32>
    %107 = arith.divf %105, %106 : vector<1x128xf32>
    %108 = vector.broadcast %107 : vector<1x128xf32> to vector<16x128xf32>
    %109 = arith.subf %101, %108 : vector<16x128xf32>
    %110 = arith.mulf %109, %109 : vector<16x128xf32>
    %cst_37 = arith.constant dense<0.000000e+00> : vector<128xf32>
    %111 = vector.multi_reduction <add>, %110, %cst_37 [0] : vector<16x128xf32> to vector<128xf32>
    %112 = vector.shape_cast %111 : vector<128xf32> to vector<1x128xf32>
    %cst_38 = arith.constant 1.600000e+01 : f32
    %113 = vector.broadcast %cst_38 : f32 to vector<1x128xf32>
    %114 = arith.divf %112, %113 : vector<1x128xf32>
    %cst_39 = arith.constant 9.99999974E-6 : f32
    %115 = vector.broadcast %cst_39 : f32 to vector<1x128xf32>
    %116 = arith.addf %114, %115 : vector<1x128xf32>
    %117 = math.rsqrt %116 : vector<1x128xf32>
    %118 = vector.broadcast %117 : vector<1x128xf32> to vector<16x128xf32>
    %119 = arith.mulf %109, %118 : vector<16x128xf32>
    %120 = vector.broadcast %102 : vector<16x1xf32> to vector<16x128xf32>
    %121 = arith.mulf %119, %120 : vector<16x128xf32>
    %122 = vector.broadcast %103 : vector<16x1xf32> to vector<16x128xf32>
    %123 = arith.addf %121, %122 : vector<16x128xf32>
    %cst_40 = arith.constant 0.000000e+00 : f32
    %124 = vector.broadcast %cst_40 : f32 to vector<16x128xf32>
    %125 = arith.maximumf %123, %124 : vector<16x128xf32>
    %126 = vector.extract_strided_slice %0 {offsets = [0, 12], sizes = [16, 1], strides = [1, 1]} : vector<32x16xf32> to vector<16x1xf32>
    %127 = vector.extract_strided_slice %0 {offsets = [0, 13], sizes = [1, 1], strides = [1, 1]} : vector<32x16xf32> to vector<1x1xf32>
    %128 = vector.broadcast %126 : vector<16x1xf32> to vector<16x128xf32>
    %129 = arith.mulf %125, %128 : vector<16x128xf32>
    %cst_41 = arith.constant dense<0.000000e+00> : vector<128xf32>
    %130 = vector.multi_reduction <add>, %129, %cst_41 [0] : vector<16x128xf32> to vector<128xf32>
    %131 = vector.shape_cast %130 : vector<128xf32> to vector<1x128xf32>
    %132 = vector.broadcast %127 : vector<1x1xf32> to vector<1x128xf32>
    %133 = arith.addf %131, %132 : vector<1x128xf32>
    %c0_42 = arith.constant 0 : index
    %c0_43 = arith.constant 0 : index
    %134 = vector.load %arg8[%c0_42, %c0_43] : memref<1x128xf32, #tpu.memory_space<vmem>>, vector<1x128xf32>
    tpu.vector_store %arg8[%c0_42, %c0_43], %133 {strides = array<i32>} : memref<1x128xf32, #tpu.memory_space<vmem>>, vector<1x128xf32>,
    return
  }
  func.func @transform_0(%arg0: i32) -> (i32, i32) {
    %c0_i32 = arith.constant 0 : i32
    %c0_i32_0 = arith.constant 0 : i32
    return %c0_i32, %arg0 : i32, i32
  }
  func.func @transform_1(%arg0: i32) -> (i32, i32) {
    %c0_i32 = arith.constant 0 : i32
    %c0_i32_0 = arith.constant 0 : i32
    %c0_i32_1 = arith.constant 0 : i32
    return %c0_i32, %c0_i32_0 : i32, i32
  }
  func.func @transform_2(%arg0: i32) -> (i32, i32) {
    %c0_i32 = arith.constant 0 : i32
    %c0_i32_0 = arith.constant 0 : i32
    %c0_i32_1 = arith.constant 0 : i32
    return %c0_i32, %c0_i32_0 : i32, i32
  }
  func.func @transform_3(%arg0: i32) -> (i32, i32) {
    %c0_i32 = arith.constant 0 : i32
    %c0_i32_0 = arith.constant 0 : i32
    %c0_i32_1 = arith.constant 0 : i32
    return %c0_i32, %c0_i32_0 : i32, i32
  }
  func.func @transform_4(%arg0: i32) -> (i32, i32) {
    %c0_i32 = arith.constant 0 : i32
    %c0_i32_0 = arith.constant 0 : i32
    %c0_i32_1 = arith.constant 0 : i32
    return %c0_i32, %c0_i32_0 : i32, i32
  }
  func.func @transform_5(%arg0: i32) -> (i32, i32) {
    %c0_i32 = arith.constant 0 : i32
    %c0_i32_0 = arith.constant 0 : i32
    %c0_i32_1 = arith.constant 0 : i32
    return %c0_i32, %c0_i32_0 : i32, i32
  }
  func.func @transform_6(%arg0: i32) -> (i32, i32) {
    %c0_i32 = arith.constant 0 : i32
    %c0_i32_0 = arith.constant 0 : i32
    %c0_i32_1 = arith.constant 0 : i32
    return %c0_i32, %c0_i32_0 : i32, i32
  }
  func.func @transform_7(%arg0: i32) -> (i32, i32) {
    %c0_i32 = arith.constant 0 : i32
    %c0_i32_0 = arith.constant 0 : i32
    return %c0_i32, %arg0 : i32, i32
  }
}

</mosaic_0001>

<bundles_post_ra>
// kernel: tpu_custom_call.1
= control target key start
LH: loop header
LB: loop body
LE: loop exit
PB: predicated region body
PF: predicated region fallthrough
CT: control target
= control target key end

     0   :  { %v867_v1 = vmov 0.0   ;;  %vm868_vm0 = vmmov 0   ;;  %vm76_vm1 = vcmask 130048   ;;  %v869_v6 = vmov 0   ;;  %s1024_s0 = inlined_call_operand.vmem [shape: bf16[32,128], index: 0, kind: input, shape index: {}]   ;;  %s1025_s1 = inlined_call_operand.vmem [shape: bf16[32,16], index: 1, kind: input, shape index: {}]   ;;  %s1026_s2 = inlined_call_operand.vmem [shape: bf16[16,16], index: 2, kind: input, shape index: {}]   ;;  %s1027_s3 = inlined_call_operand.vmem [shape: bf16[32,32], index: 3, kind: input, shape index: {}]   ;;  %s1028_s4 = inlined_call_operand.vmem [shape: bf16[32,16], index: 4, kind: input, shape index: {}]   ;;  %s1029_s5 = inlined_call_operand.vmem [shape: bf16[16,32], index: 5, kind: input, shape index: {}]   ;;  %s1030_s6 = inlined_call_operand.vmem [shape: f32[32,16], index: 6, kind: input, shape index: {}]   ;;  %s1031_s7 = inlined_call_operand.hbm [shape: f32[1,128], index: 7, kind: output, shape index: {}]  }
   0x1   :  { %v825_v0 = vld [vmem:[%s1024_s0] sm:$0xff]   ;;  %746 = vmatprep.subr.bf16.mxu1 %v867_v1  ;;  %v826_v2 = vld [vmem:[%s1024_s0 + $0x8] sm:$0xff]   ;;  %748 = vmatprep.mubr.msk.bf16.mxu1 %vm868_vm0, %v867_v1  ;;  %v870_v8 = vmov 3  }
   0x2   :  { %740 = vmatprep.subr.bf16.mxu0 %v825_v0  ;;  %v827_v3 = vld [vmem:[%s1025_s1] sm:$0xff]   ;;  %747 = vmatpush3.bf16.msra.mxu1 %v826_v2  ;;  %v829_v5 = vld [vmem:[%s1025_s1 + $0x8] sm:$0xff]  }
   0x3   :  { %741 = vmatpush3.bf16.msra.mxu0 %v825_v0  ;;  %v828_v4 = vld [vmem:[%s1026_s2] sm:$0xff]   ;;  %742 = vmatprep.mubr.msk.bf16.mxu0 %vm76_vm1, %v827_v3  ;;  %v954_v9 = vld [vmem:[%s1030_s6 + $0x8] sm:$0xff] }
   0x4   :  { %795 = vset.pattern.permute.xlu0 %v869_v6  ;;  %v946_v7 = vld [vmem:[%s1030_s6] sm:$0xff]  ;;  %796 = vset.pattern.permute.xlu1 %v870_v8 }
   0x5   :  { %766 = vmatprep.subr.bf16.mxu1 %v867_v1  ;;  %749 = vmatmul.mubr.msk.bf16.vlgmr.msra.gmra.mrb[0].mxu1 %vm76_vm1, %v828_v4 }
   0x6   :  { %743 = vmatmul.mubr.msk.bf16.vlgmr.msra.gmra.mrb[0].mxu0 %vm76_vm1, %v829_v5  ;;  %42 = vperm.xlu0 %795, %v946_v7  }
   0x7   :  { %214 = vperm.xlu1 %796, %v946_v7   ;;  %770 = vmatprep.mubr.msk.bf16.mxu1 %vm868_vm0, %v867_v1 }
   0x8   :  { %12 = vsyncpa [#allocation3], 0  ;;  %v30_v10 = vld [vmem:[%s1030_s6 + $0x10] sm:$0xff]  ;;  %v31_v11 = vld [vmem:[%s1030_s6 + $0x18] sm:$0xff]  ;;  %v871_v12 = vmov 4   ;;  %v872_v13 = vmov 5  }
   0x9   :  { %v873_v14 = vmov 2   ;;  %v874_v15 = vmov 1   ;;  %v830_v16 = vld [vmem:[%s1028_s4] sm:$0xff]   ;;  %v875_v17 = vmov 6   ;;  %v876_v18 = vmov 7  }
   0xa   :  { %47 = vperm.xlu0 %795, %v954_v9   ;;  %754 = vmatprep.mubr.msk.bf16.mxu0 %vm76_vm1, %v830_v16  ;;  %v877_v19 = vmov 8   ;;  %vm409_vm2 = vcmask 261120  }
   0xb   :  { %218 = vperm.xlu1 %796, %v954_v9  }
   0xe   :  { %52 = vperm.xlu0 %795, %v30_v10  }
   0xf   :  { %797 = vset.pattern.permute.xlu1 %v869_v6 }
  0x10   :  { %57 = vperm.xlu1 %797, %v31_v11  }
  0x12   :  { %798 = vset.pattern.permute.xlu0 %v871_v12 }
  0x13   :  { %302 = vperm.xlu0 %798, %v946_v7  }
  0x14   :  { %799 = vset.pattern.permute.xlu1 %v871_v12 }
  0x15   :  { %306 = vperm.xlu1 %799, %v954_v9  }
  0x17   :  { %801 = vset.pattern.permute.xlu0 %v872_v13 }
  0x18   :  { %316 = vperm.xlu0 %801, %v954_v9  }
  0x19   :  { %800 = vset.pattern.permute.xlu1 %v872_v13 }
  0x1a   :  { %312 = vperm.xlu1 %800, %v946_v7  }
  0x1c   :  { %803 = vset.pattern.permute.xlu0 %v873_v14 }
  0x1d   :  { %188 = vperm.xlu0 %803, %v946_v7  }
  0x1e   :  { %802 = vset.pattern.permute.xlu1 %v874_v15 }
  0x1f   :  { %168 = vperm.xlu1 %802, %v946_v7  }
  0x21   :  { %806 = vset.pattern.permute.xlu0 %v874_v15 }
  0x22   :  { %180 = vperm.xlu0 %806, %v31_v11  }
  0x23   :  { %172 = vperm.xlu1 %802, %v954_v9  }
  0x26   :  { %808 = vset.pattern.permute.xlu0 %v875_v17 }
  0x27   :  { %804 = vset.pattern.permute.xlu1 %v873_v14  ;;  %466 = vperm.xlu0 %808, %v946_v7  }
  0x28   :  { %192 = vperm.xlu1 %804, %v954_v9  }
  0x2b   :  { %478 = vperm.xlu0 %808, %v31_v11  }
  0x2c   :  { %805 = vset.pattern.permute.xlu1 %v874_v15 }
  0x2d   :  { %176 = vperm.xlu1 %805, %v30_v10  }
  0x2f   :  { %811 = vset.pattern.permute.xlu0 %v876_v18 }
  0x30   :  { %524 = vperm.xlu0 %811, %v954_v9  }
  0x31   :  { %807 = vset.pattern.permute.xlu1 %v873_v14 }
  0x32   :  { %196 = vperm.xlu1 %807, %v30_v10  }
  0x34   :  { %528 = vperm.xlu0 %811, %v30_v10  }
  0x36   :  { %200 = vperm.xlu1 %807, %v31_v11  }
  0x38   :  { %814 = vset.pattern.permute.xlu0 %v877_v19 }
  0x39   :  { %548 = vperm.xlu0 %814, %v30_v10  }
  0x3a   :  { %809 = vset.pattern.permute.xlu1 %v875_v17 }
  0x3b   :  { %470 = vperm.xlu1 %809, %v954_v9  }
  0x3f   :  { %474 = vperm.xlu1 %809, %v30_v10  }
  0x43   :  { %810 = vset.pattern.permute.xlu1 %v876_v18 }
  0x44   :  { %520 = vperm.xlu1 %810, %v946_v7  }
  0x48   :  { %812 = vset.pattern.permute.xlu1 %v877_v19 }
  0x49   :  { %540 = vperm.xlu1 %812, %v946_v7  }
  0x4d   :  { %544 = vperm.xlu1 %812, %v954_v9  }
  0x51   :  { %813 = vset.pattern.permute.xlu1 %v876_v18 }
  0x52   :  { %532 = vperm.xlu1 %813, %v31_v11  }
  0x56   :  { %815 = vset.pattern.permute.xlu1 %v877_v19 }
  0x57   :  { %552 = vperm.xlu1 %815, %v31_v11  }
  0x85   :  { %v43_v20 = vpop.permute.xlu0 %42 }
  0x86   :  { %v215_v21 = vpop.permute.xlu1 %214 }
  0x89   :  { %v48_v22 = vpop.permute.xlu0 %47 }
  0x8a   :  { %v219_v23 = vpop.permute.xlu1 %218 }
  0x8d   :  { %v53_v36 = vpop.permute.xlu0 %52 }
  0x8f   :  { %v58_v38 = vpop.permute.xlu1 %57 }
  0x94   :  { %v307_v62 = vpop.permute.xlu1 %306 }
  0x99   :  { %v313_v11 = vpop.permute.xlu1 %312 }
  0xd8   :  { %v269_v24 = vpop.f32.mrb[0].mxu1 }
  0xd9   :  { %v744_v25 = vpop.f32.mrb[0].mxu0  ;;  %v750_v26 = vpop.f32.mrb[1].mxu1  ;;  %v270_v30 = vadd.f32 %v269_v24, %v215_v21 }
  0xda   :  { %v117_v27 = vpop.f32.mrb[1].mxu0  ;;  %v272_v28 = vpop.f32.mrb[2].mxu1  ;;  %v126_v39 = vadd.f32 %v744_v25, %v53_v36 }
  0xdb   :  { %v745_v29 = vpop.f32.mrb[2].mxu0  ;;  %v273_v31 = vadd.f32 %v272_v28, %v219_v23  ;;  %v751_v32 = vpop.f32.mrb[3].mxu1  ;;  %v118_v34 = vadd.f32 %v117_v27, %v43_v20 }
  0xdc   :  { %v120_v33 = vpop.f32.mrb[3].mxu0  ;;  %v129_v42 = vadd.f32 %v745_v29, %v58_v38  ;;  %v169_v20 = vpop.permute.xlu1 %168 }
  0xdd   :  { %v121_v35 = vadd.f32 %v120_v33, %v48_v22  ;;  %v276_v37 = vadd.f32 %v273_v31, %v270_v30 }
  0xdf   :  { %v132_v40 = vadd.f32 %v121_v35, %v118_v34  ;;  %v277_v41 = vrot.slane %v276_v37, 4 }
  0xe0   :  { %v173_v28 = vpop.permute.xlu1 %172 }
  0xe1   :  { %v133_v43 = vadd.f32 %v132_v40, %v126_v39  ;;  %v278_v44 = vadd.f32 %v277_v41, %v276_v37 }
  0xe3   :  { %v134_v45 = vadd.f32 %v133_v43, %v129_v42  ;;  %v279_v46 = vrot.slane %v278_v44, 2 }
  0xe4   :  { %v193_v32 = vpop.permute.xlu1 %192 }
  0xe5   :  { %v135_v47 = vrot.slane %v134_v45, 4  ;;  %v280_v48 = vadd.f32 %v279_v46, %v278_v44 }
  0xe7   :  { %v136_v49 = vadd.f32 %v135_v47, %v134_v45  ;;  %v281_v50 = vrot.slane %v280_v48, 1 }
  0xe8   :  { %v177_v36 = vpop.permute.xlu1 %176 }
  0xe9   :  { %v137_v51 = vrot.slane %v136_v49, 2  ;;  %v282_v52 = vadd.f32 %v281_v50, %v280_v48 }
  0xeb   :  { %v138_v53 = vadd.f32 %v137_v51, %v136_v49  ;;  %v284_v54 = vmul.f32 0.0625, %v282_v52 }
  0xec   :  { %v197_v45 = vpop.permute.xlu1 %196 }
  0xed   :  { %v139_v55 = vrot.slane %v138_v53, 1  ;;  %v285_v56 = vsub.f32 %v270_v30, %v284_v54  ;;  %v286_v57 = vsub.f32 %v273_v31, %v284_v54  ;;  %v303_v30 = vpop.permute.xlu0 %302 }
  0xef   :  { %v140_v58 = vadd.f32 %v139_v55, %v138_v53  ;;  %v287_v59 = vmul.f32 %v285_v56, %v285_v56  ;;  %v288_v60 = vmul.f32 %v286_v57, %v286_v57 }
  0xf0   :  { %v201_v55 = vpop.permute.xlu1 %200 }
  0xf1   :  { %v142_v61 = vmul.f32 0.03125, %v140_v58  ;;  %v289_v63 = vadd.f32 %v288_v60, %v287_v59 }
  0xf3   :  { %v144_v0 = vsub.f32 %v121_v35, %v142_v61  ;;  %v145_v2 = vsub.f32 %v126_v39, %v142_v61  ;;  %v146_v3 = vsub.f32 %v129_v42, %v142_v61  ;;  %v143_v4 = vsub.f32 %v118_v34, %v142_v61  ;;  %v317_v35 = vpop.permute.xlu0 %316  ;;  %v832_v61 = vld [vmem:[%s1027_s3] sm:$0xff]  }
  0xf4   :  { %v290_v5 = vrot.slane %v289_v63, 4 }
  0xf5   :  { %v148_v6 = vmul.f32 %v144_v0, %v144_v0  ;;  %v147_v8 = vmul.f32 %v143_v4, %v143_v4  ;;  %v149_v12 = vmul.f32 %v145_v2, %v145_v2  ;;  %v150_v15 = vmul.f32 %v146_v3, %v146_v3 }
  0xf6   :  { %v291_v10 = vadd.f32 %v290_v5, %v289_v63 }
  0xf7   :  { %v151_v13 = vadd.f32 %v148_v6, %v147_v8  ;;  %v189_v42 = vpop.permute.xlu0 %188 }
  0xf8   :  { %v292_v14 = vrot.slane %v291_v10, 2 }
  0xf9   :  { %v152_v16 = vadd.f32 %v151_v13, %v149_v12  ;;  %v878_v12 = vmov 9   ;;  %v879_v13 = vmov 10  }
  0xfa   :  { %v293_v17 = vadd.f32 %v292_v14, %v291_v10  ;;  %816 = vset.pattern.permute.xlu1 %v878_v12  ;;  %817 = vset.pattern.permute.xlu0 %v878_v12  ;;  %v880_v14 = vmov 11  }
  0xfb   :  { %v153_v18 = vadd.f32 %v152_v16, %v150_v15  ;;  %v181_v50 = vpop.permute.xlu0 %180  ;;  %568 = vperm.xlu1 %816, %v946_v7   ;;  %572 = vperm.xlu0 %817, %v954_v9   ;;  %v881_v15 = vmov 12   ;;  %v882_v16 = vmov 13  }
  0xfc   :  { %v294_v19 = vrot.slane %v293_v17, 1 }
  0xfd   :  { %v154_v21 = vrot.slane %v153_v18, 4 }
  0xfe   :  { %v295_v22 = vadd.f32 %v294_v19, %v293_v17  ;;  %v471_v17 = vpop.permute.xlu1 %470 }
  0xff   :  { %v155_v23 = vadd.f32 %v154_v21, %v153_v18  ;;  %818 = vset.pattern.permute.xlu1 %v879_v13  ;;  %819 = vset.pattern.permute.xlu0 %v880_v14  ;;  %v467_v18 = vpop.permute.xlu0 %466 }
 0x100   :  { %v296_v24 = vmul.f32 0.0625, %v295_v22  ;;  %649 = vperm.xlu1 %818, %v946_v7   ;;  %659 = vperm.xlu0 %819, %v946_v7  }
 0x101   :  { %v156_v25 = vrot.slane %v155_v23, 2 }
 0x102   :  { %v297_v26 = vadd.f32 1e-05, %v296_v24  ;;  %v475_v22 = vpop.permute.xlu1 %474 }
 0x103   :  { %v157_v27 = vadd.f32 %v156_v25, %v155_v23 }
 0x104   :  { %835 = vrsqrt.f32 %v297_v26  ;;  %653 = vperm.xlu1 %818, %v954_v9   ;;  %822 = vset.pattern.permute.xlu0 %v881_v15  ;;  %v479_v26 = vpop.permute.xlu0 %478 }
 0x105   :  { %v158_v29 = vrot.slane %v157_v27, 1  ;;  %675 = vperm.xlu0 %822, %v954_v9  }
 0x107   :  { %v159_v31 = vadd.f32 %v158_v29, %v157_v27 }
 0x108   :  { %820 = vset.pattern.permute.xlu1 %v880_v14 }
 0x109   :  { %v160_v33 = vmul.f32 0.03125, %v159_v31  ;;  %663 = vperm.xlu1 %820, %v954_v9   ;;  %824 = vset.pattern.permute.xlu0 %v882_v16 }
 0x10b   :  { %v161_v34 = vadd.f32 1e-05, %v160_v33 }
 0x10d   :  { %837 = vrsqrt.f32 %v161_v34  ;;  %821 = vset.pattern.permute.xlu1 %v881_v15 }
 0x10e   :  { %v836_v37 = vpop.eup %835  ;;  %671 = vperm.xlu1 %821, %v946_v7  }
 0x10f   :  { %v300_v38 = vmul.f32 %v836_v37, %v286_v57  ;;  %v299_v39 = vmul.f32 %v836_v37, %v285_v56  ;;  %v831_v56 = vld [vmem:[%s1028_s4 + $0x8] sm:$0xff]  }
 0x111   :  { %v310_v40 = vmul.f32 %v307_v62, %v300_v38  ;;  %v309_v41 = vmul.f32 %v303_v30, %v299_v39 }
 0x112   :  { %823 = vset.pattern.permute.xlu1 %v882_v16 }
 0x113   :  { %v319_v43 = vadd.f32 %v313_v11, %v309_v41  ;;  %v320_v44 = vadd.f32 %v317_v35, %v310_v40  ;;  %v833_v11 = vld [vmem:[%s1027_s3 + $0x8] sm:$0xff]   ;;  %688 = vperm.xlu1 %823, %v946_v7  }
 0x115   :  { %v321_v46 = vmax.f32 %v319_v43, 0.0  ;;  %v322_v47 = vmax.f32 %v320_v44, 0.0 }
 0x117   :  { %v838_v48 = vpop.eup %837  ;;  %v333_v49 = vpack.c.bf16 %v322_v47, %v321_v46 }
 0x118   :  { %v163_v51 = vmul.f32 %v838_v48, %v143_v4  ;;  %v164_v52 = vmul.f32 %v838_v48, %v144_v0  ;;  %v165_v53 = vmul.f32 %v838_v48, %v145_v2  ;;  %v166_v54 = vmul.f32 %v838_v48, %v146_v3 }
 0x119   :  { %752 = vmatprep.subr.bf16.mxu0 %v333_v49 }
 0x11a   :  { %v183_v57 = vmul.f32 %v169_v20, %v163_v51  ;;  %v184_v58 = vmul.f32 %v173_v28, %v164_v52  ;;  %v185_v59 = vmul.f32 %v177_v36, %v165_v53  ;;  %753 = vmatpush3.bf16.msra.mxu0 %v333_v49  ;;  %v186_v60 = vmul.f32 %v181_v50, %v166_v54  ;;  %v521_v51 = vpop.permute.xlu1 %520 }
 0x11c   :  { %v204_v62 = vadd.f32 %v193_v32, %v184_v58  ;;  %v203_v63 = vadd.f32 %v189_v42, %v183_v57  ;;  %v205_v0 = vadd.f32 %v197_v45, %v185_v59  ;;  %v206_v2 = vadd.f32 %v201_v55, %v186_v60  ;;  %v525_v58 = vpop.permute.xlu0 %524 }
 0x11d   :  { %755 = vmatmul.mubr.msk.bf16.vlgmr.msra.gmra.mrb[4].mxu0 %vm76_vm1, %v831_v56 }
 0x11e   :  { %v208_v3 = vmax.f32 %v204_v62, 0.0  ;;  %v207_v4 = vmax.f32 %v203_v63, 0.0  ;;  %v209_v5 = vmax.f32 %v205_v0, 0.0  ;;  %v210_v6 = vmax.f32 %v206_v2, 0.0  ;;  %762 = vmatprep.mubr.msk.bf16.mxu0 %vm409_vm2, %v832_v61  ;;  %v541_v56 = vpop.permute.xlu1 %540 }
 0x120   :  { %v327_v8 = vpack.c.bf16 %v208_v3, %v207_v4  ;;  %v328_v10 = vpack.c.bf16 %v210_v6, %v209_v5  ;;  %v529_v61 = vpop.permute.xlu0 %528 }
 0x122   :  { %758 = vmatprep.subr.bf16.mxu0 %v327_v8  ;;  %v545_v59 = vpop.permute.xlu1 %544 }
 0x123   :  { %759 = vmatpush3.bf16.msra.mxu0 %v327_v8 }
 0x124   :  { %760 = vmatprep.subr.bf16.mxu0 %v328_v10  ;;  %v549_v5 = vpop.permute.xlu0 %548 }
 0x126   :  { %v533_v60 = vpop.permute.xlu1 %532 }
 0x127   :  { %761 = vmatpush3.bf16.msra.mxu0 %v328_v10 }
 0x12a   :  { %763 = vmatmul.mubr.msk.bf16.vlgmr.msra.gmra.mrb[4].mxu0 %vm409_vm2, %v833_v11  ;;  %v553_v4 = vpop.permute.xlu1 %552 }
 0x1fd   :  { %v764_v19 = vpop.f32.mrb[4].mxu0 }
 0x1fe   :  { %v450_v20 = vpop.f32.mrb[5].mxu0  ;;  %v483_v27 = vadd.f32 %v764_v19, %v475_v22  ;;  %v834_v22 = vld [vmem:[%s1029_s5] sm:$0xff]   ;;  %s883_s5 = smov [#allocation2]  }
 0x1ff   :  { %v765_v21 = vpop.f32.mrb[6].mxu0  ;;  %v481_v24 = vadd.f32 %v467_v18, %v450_v20  ;;  %s699_s23 = sshll.u32 %s883_s5, 4  ;;  %s700_s23 = int_to_ptr.vmem [resolvable:$true] %s699_s23 }
 0x200   :  { %v453_v23 = vpop.f32.mrb[7].mxu0  ;;  %v484_v28 = vadd.f32 %v765_v21, %v479_v26  ;;  %s843_s24 = scalar_lea.vmem %s700_s23, 16  ;;  %s847_s25 = scalar_lea.vmem %s700_s23, 32 }
 0x201   :  { %v482_v25 = vadd.f32 %v471_v17, %v453_v23  ;;  %v569_v23 = vpop.permute.xlu1 %568  ;;  %p844_p0 = scmp.ne.s32.totalorder %s700_s23, %s843_s24  ;;  %p848_p1 = scmp.lt.s32.totalorder %s700_s23, %s700_s23 }
 0x202   :  { %p849_p2 = scmp.lt.s32.totalorder %s847_s25, %s843_s24 }
 0x203   :  { %v485_v9 = vadd.f32 %v482_v25, %v481_v24 }
 0x204   :  { %p850_p3 = por %p849_p2, %p848_p1 }
 0x205   :  { %v486_v29 = vadd.f32 %v485_v9, %v483_v27 }
 0x206   :  { %p851_p4 = pnand %p850_p3, %p844_p0 }
 0x207   :  { %v487_v30 = vadd.f32 %v486_v29, %v484_v28 }
 0x209   :  { %v488_v31 = vrot.slane %v487_v30, 4 }
 0x20b   :  { %v489_v32 = vadd.f32 %v488_v31, %v487_v30 }
 0x20d   :  { %v490_v33 = vrot.slane %v489_v32, 2 }
 0x20f   :  { %v491_v34 = vadd.f32 %v490_v33, %v489_v32 }
 0x211   :  { %v492_v7 = vrot.slane %v491_v34, 1 }
 0x213   :  { %v493_v35 = vadd.f32 %v492_v7, %v491_v34 }
 0x215   :  { %v494_v36 = vmul.f32 0.03125, %v493_v35 }
 0x217   :  { %v496_v37 = vsub.f32 %v482_v25, %v494_v36  ;;  %v498_v38 = vsub.f32 %v484_v28, %v494_v36  ;;  %v495_v39 = vsub.f32 %v481_v24, %v494_v36  ;;  %v497_v40 = vsub.f32 %v483_v27, %v494_v36  ;;  %v573_v25 = vpop.permute.xlu0 %572 }
 0x219   :  { %v500_v41 = vmul.f32 %v496_v37, %v496_v37  ;;  %v499_v42 = vmul.f32 %v495_v39, %v495_v39  ;;  %v501_v43 = vmul.f32 %v497_v40, %v497_v40  ;;  %v502_v45 = vmul.f32 %v498_v38, %v498_v38 }
 0x21b   :  { %v503_v44 = vadd.f32 %v500_v41, %v499_v42 }
 0x21d   :  { %v504_v46 = vadd.f32 %v503_v44, %v501_v43 }
 0x21f   :  { %v505_v47 = vadd.f32 %v504_v46, %v502_v45 }
 0x221   :  { %v506_v48 = vrot.slane %v505_v47, 4 }
 0x223   :  { %v507_v49 = vadd.f32 %v506_v48, %v505_v47 }
 0x225   :  { %v508_v50 = vrot.slane %v507_v49, 2 }
 0x227   :  { %v509_v52 = vadd.f32 %v508_v50, %v507_v49  ;;  %v650_v49 = vpop.permute.xlu1 %649 }
 0x229   :  { %v510_v53 = vrot.slane %v509_v52, 1 }
 0x22b   :  { %v511_v54 = vadd.f32 %v510_v53, %v509_v52  ;;  %v654_v50 = vpop.permute.xlu1 %653  ;;  %v660_v53 = vpop.permute.xlu0 %659 }
 0x22d   :  { %v512_v55 = vmul.f32 0.03125, %v511_v54 }
 0x22f   :  { %v513_v57 = vadd.f32 1e-05, %v512_v55  ;;  %v664_v52 = vpop.permute.xlu1 %663 }
 0x231   :  { %839 = vrsqrt.f32 %v513_v57 }
 0x23b   :  { %v840_v62 = vpop.eup %839 }
 0x23c   :  { %v515_v63 = vmul.f32 %v840_v62, %v495_v39  ;;  %v516_v0 = vmul.f32 %v840_v62, %v496_v37  ;;  %v518_v2 = vmul.f32 %v840_v62, %v498_v38  ;;  %v517_v3 = vmul.f32 %v840_v62, %v497_v40 }
 0x23e   :  { %v535_v6 = vmul.f32 %v521_v51, %v515_v63  ;;  %v536_v8 = vmul.f32 %v525_v58, %v516_v0  ;;  %v538_v10 = vmul.f32 %v533_v60, %v518_v2  ;;  %v537_v11 = vmul.f32 %v529_v61, %v517_v3  ;;  %v672_v60 = vpop.permute.xlu1 %671  ;;  %v676_v61 = vpop.permute.xlu0 %675 }
 0x240   :  { %v555_v12 = vadd.f32 %v541_v56, %v535_v6  ;;  %v556_v13 = vadd.f32 %v545_v59, %v536_v8  ;;  %v558_v14 = vadd.f32 %v553_v4, %v538_v10  ;;  %v557_v15 = vadd.f32 %v549_v5, %v537_v11 }
 0x242   :  { %v559_v16 = vmax.f32 %v555_v12, 0.0  ;;  %v560_v17 = vmax.f32 %v556_v13, 0.0  ;;  %v562_v18 = vmax.f32 %v558_v14, 0.0  ;;  %v561_v19 = vmax.f32 %v557_v15, 0.0  ;;  %v689_v11 = vpop.permute.xlu1 %688 }
 0x244   :  { %v565_v20 = vpack.c.bf16 %v560_v17, %v559_v16  ;;  %v566_v21 = vpack.c.bf16 %v562_v18, %v561_v19 }
 0x246   :  { %767 = vmatpush3.bf16.msra.mxu1 %v565_v20 }
 0x247   :  { %768 = vmatprep.subr.bf16.mxu1 %v867_v1 }
 0x24a   :  { %769 = vmatpush3.bf16.msra.mxu1 %v566_v21 }
 0x24d   :  { %771 = vmatmul.mubr.msk.bf16.vlgmr.msra.gmra.mrb[4].mxu1 %vm409_vm2, %v834_v22 }
 0x320   :  { %v617_v24 = vpop.f32.mrb[4].mxu1 }
 0x321   :  { %v772_v26 = vpop.f32.mrb[5].mxu1  ;;  %v618_v9 = vadd.f32 %v617_v24, %v569_v23 }
 0x322   :  { %v620_v27 = vpop.f32.mrb[6].mxu1 }
 0x323   :  { %v621_v28 = vadd.f32 %v620_v27, %v573_v25  ;;  %v773_v29 = vpop.f32.mrb[7].mxu1 }
 0x325   :  { %v624_v30 = vadd.f32 %v621_v28, %v618_v9 }
 0x327   :  { %v625_v31 = vrot.slane %v624_v30, 4 }
 0x329   :  { %v626_v32 = vadd.f32 %v625_v31, %v624_v30 }
 0x32b   :  { %v627_v33 = vrot.slane %v626_v32, 2 }
 0x32d   :  { %v628_v1 = vadd.f32 %v627_v33, %v626_v32 }
 0x32f   :  { %v629_v34 = vrot.slane %v628_v1, 1 }
 0x331   :  { %v630_v7 = vadd.f32 %v629_v34, %v628_v1 }
 0x333   :  { %v631_v35 = vmul.f32 0.0625, %v630_v7 }
 0x335   :  { %v633_v36 = vsub.f32 %v621_v28, %v631_v35  ;;  %v632_v37 = vsub.f32 %v618_v9, %v631_v35 }
 0x337   :  { %v635_v38 = vmul.f32 %v633_v36, %v633_v36  ;;  %v634_v39 = vmul.f32 %v632_v37, %v632_v37 }
 0x339   :  { %v636_v40 = vadd.f32 %v635_v38, %v634_v39 }
 0x33b   :  { %v637_v41 = vrot.slane %v636_v40, 4 }
 0x33d   :  { %v638_v42 = vadd.f32 %v637_v41, %v636_v40 }
 0x33f   :  { %v639_v43 = vrot.slane %v638_v42, 2 }
 0x341   :  { %v640_v44 = vadd.f32 %v639_v43, %v638_v42 }
 0x343   :  { %v641_v45 = vrot.slane %v640_v44, 1 }
 0x345   :  { %v642_v46 = vadd.f32 %v641_v45, %v640_v44 }
 0x347   :  { %v643_v47 = vmul.f32 0.0625, %v642_v46 }
 0x349   :  { %v644_v48 = vadd.f32 1e-05, %v643_v47 }
 0x34b   :  { %841 = vrsqrt.f32 %v644_v48 }
 0x355   :  { %v842_v51 = vpop.eup %841 }
 0x356   :  { %v646_v54 = vmul.f32 %v842_v51, %v632_v37  ;;  %v647_v55 = vmul.f32 %v842_v51, %v633_v36 }
 0x358   :  { %v656_v56 = vmul.f32 %v650_v49, %v646_v54  ;;  %v657_v57 = vmul.f32 %v654_v50, %v647_v55 }
 0x35a   :  { %v667_v58 = vadd.f32 %v664_v52, %v657_v57  ;;  %v666_v59 = vadd.f32 %v660_v53, %v656_v56 }
 0x35c   :  { %v669_v62 = vmax.f32 %v667_v58, 0.0  ;;  %v668_v63 = vmax.f32 %v666_v59, 0.0 }
 0x35e   :  { %v678_v0 = vmul.f32 %v672_v60, %v668_v63  ;;  %v679_v2 = vmul.f32 %v676_v61, %v669_v62 }
 0x360   :  { %v680_v3 = vadd.f32 %v679_v2, %v678_v0 }
 0x362   :  { %v681_v4 = vrot.slane %v680_v3, 4 }
 0x364   :  { %v682_v5 = vadd.f32 %v681_v4, %v680_v3 }
 0x366   :  { %v683_v6 = vrot.slane %v682_v5, 2 }
 0x368   :  { %v684_v8 = vadd.f32 %v683_v6, %v682_v5 }
 0x36a   :  { %v685_v10 = vrot.slane %v684_v8, 1 }
 0x36c   :  { %v686_v12 = vadd.f32 %v685_v10, %v684_v8 }
 0x36e   :  { %v691_v13 = vadd.f32 %v689_v11, %v686_v12 }
 0x370   :  { %692 = vst [vmem:[#allocation2] sm:$0x1] %v691_v13 }
 0x371   :  { %854 = shalt.err (!%p851_p4)
}
 0x372   :  { %s855_s28 = scalar_lea.hbm %s1031_s7, 16 }
 0x373   :  { %p856_p5 = scmp.ne.s32.totalorder %s1031_s7, %s855_s28  ;;  %p859_p6 = scmp.lt.u32.totalorder %s855_s28, %s1031_s7 }
 0x375   :  { %p861_p7 = pnand %p859_p6, %p856_p5 }
 0x377   :  { %864 = shalt.err (!%p861_p7)
}
 0x378   :  { %702 = dma.vmem_to_hbm [thread:$0]  %s700_s23, 16, %s1031_s7, [#allocation3]  }
 0x379   :  { %865 = dma.done.wait [#allocation3], 16  }
 0x37a   :  { %866 = vsyncadd [#allocation3], 4294967280 }
 0x37b   :  { %706 = vsyncpa [#allocation3], 1 }

</bundles_post_ra>
